<compile_context>
chip_gen: v7x
topology: tpu7x:2x2x1
jax: 0.10.0
libtpu: 0.0.40
codegen_flags: <defaults>
</compile_context>

<pallas_src>
import math

import jax
import jax.numpy as jnp
from jax.experimental import pallas as pl

B, S, E, HEADS, FF = 2, 8, 32, 4, 64
D_HEAD = E // HEADS            # 8
CHUNKS = E // D_HEAD           # 4 column chunks per row (== HEADS)
ROWS_PER_HEAD = S // HEADS     # 2
R = B * S                      # 16 activation rows handled in the single step
LN_EPS = 1e-5
NEG_INF = -1e30                # large-negative finite; exp() underflows to 0


# ----------------------------- kernel -------------------------------------- #

def _layer_norm(x, gamma, beta):
    mu = jnp.mean(x, axis=-1, keepdims=True)
    var = jnp.mean((x - mu) ** 2, axis=-1, keepdims=True)
    return (x - mu) * jax.lax.rsqrt(var + LN_EPS) * gamma + beta


def encoder_block_kernel(x_ref, wqkv_ref, bqkv_ref, bias_ref,
                         g1_ref, be1_ref, w1_ref, b1_ref,
                         w2_ref, b2_ref, g2_ref, be2_ref, out_ref):
    x = x_ref[...]                                                    # (R, E)

    # --- fused QKV projection: one (R,E)@(E,3E) MXU pass ---
    qkv = (jnp.dot(x, wqkv_ref[...], preferred_element_type=jnp.float32)
           + bqkv_ref[...])                                           # (R, 3E)

    # --- bug-compatible head split (torch `.view(b, heads, s, -1)`) ---
    # Stack the D_HEAD-wide column chunks along rows (no in-kernel reshape):
    #   stacked[c*R + row, d] == proj[row, c*D_HEAD + d]
    # Row i of `stacked` is the query/key/value vector of batch (i%R)//S,
    # head ((i%R)%S)//ROWS_PER_HEAD; the permutation is undone exactly below.
    def stack_heads(col0):
        return jnp.concatenate(
            [qkv[:, col0 + c * D_HEAD: col0 + (c + 1) * D_HEAD]
             for c in range(CHUNKS)], axis=0)                         # (CHUNKS*R, D_HEAD)

    qs = stack_heads(0)          # Q
    ks = stack_heads(E)          # K
    vs = stack_heads(2 * E)      # V

    # --- attention: two full-size matmuls instead of B*HEADS tiny ones ---
    # NT contraction (last dims of both operands) -> no materialized K^T.
    # Bug-compatible scale: sqrt(K.shape[-1]) after transpose(2,3) == sqrt(s_k).
    logits = jax.lax.dot_general(
        qs, ks, dimension_numbers=(((1,), (1,)), ((), ())),
        preferred_element_type=jnp.float32) * (1.0 / math.sqrt(S))
    # Precomputed additive block-diagonal bias: 0 where (batch, head) matches,
    # -1e30 elsewhere -> one wide softmax == independent per-(batch,head)
    # softmaxes (off-block weights underflow to exactly 0).
    logits = logits + bias_ref[...]
    # TODO(synk): optional src_mask (masked_fill with -inf) not exercised; the
    # example call uses mask=None, matching EncoderBlock's default path.

    m = jnp.max(logits, axis=-1, keepdims=True)
    p = jnp.exp(logits - m)
    l = jnp.sum(p, axis=-1, keepdims=True)                            # (CHUNKS*R, 1)
    o_perm = jnp.dot(p, vs, preferred_element_type=jnp.float32)       # (CHUNKS*R, D_HEAD)
    # Normalize after P@V (smaller tensor) with the EUP approximate reciprocal.
    o_perm = o_perm * pl.reciprocal(l, approx=True)

    # --- bug-compatible head merge (torch `.view(b, s_q, -1)`) ---
    # Row-block c of o_perm is exactly column-chunk c of the (R, E) output.
    attn_se = jnp.concatenate(
        [o_perm[c * R:(c + 1) * R, :] for c in range(CHUNKS)], axis=1)  # (R, E)

    # --- residual + LN1 + MLP(GELU) + residual + LN2 (dropouts = identity) ---
    h1 = _layer_norm(attn_se + x, g1_ref[...], be1_ref[...])
    f = jnp.dot(h1, w1_ref[...], preferred_element_type=jnp.float32) + b1_ref[...]
    f = 0.5 * f * (1.0 + jax.lax.erf(f * (1.0 / math.sqrt(2.0))))     # exact GELU
    f = jnp.dot(f, w2_ref[...], preferred_element_type=jnp.float32) + b2_ref[...]
    out_ref[...] = _layer_norm(f + h1, g2_ref[...], be2_ref[...])


# ------------------------ one-time parameter prep --------------------------- #

def prepare_params(p):
    """Hoisted out of the per-forward path: fuse QKV weights/biases and build
    the additive block-diagonal attention bias once."""
    wqkv = jnp.concatenate([p["wq_t"], p["wk_t"], p["wv_t"]], axis=1)   # (E, 3E)
    bqkv = jnp.concatenate([p["bq"], p["bk"], p["bv"]], axis=1)         # (1, 3E)

    # Stacked-row index i = c*R + (b*S + a): batch = (i%R)//S, head = a//2.
    idx = jnp.arange(CHUNKS * R, dtype=jnp.int32)
    row = idx % R
    b_idx = row // S
    head = (row % S) // ROWS_PER_HEAD
    same = (b_idx[:, None] == b_idx[None, :]) & (head[:, None] == head[None, :])
    attn_bias = jnp.where(same, 0.0, NEG_INF).astype(jnp.float32)       # (CHUNKS*R, CHUNKS*R)

    return {
        "wqkv": wqkv, "bqkv": bqkv, "attn_bias": attn_bias,
        "g1": p["g1"], "beta1": p["beta1"],
        "w1_t": p["w1_t"], "b1": p["b1"],
        "w2_t": p["w2_t"], "b2": p["b2"],
        "g2": p["g2"], "beta2": p["beta2"],
    }


# ----------------------------- wrapper -------------------------------------- #

@jax.jit
def encoder_block(src, prep):
    b, s, e = src.shape
    x2d = src.reshape(b * s, e)          # free relayout in HBM (contiguous)

    # Single step, no grid: every operand is a whole-array VMEM block, DMA'd
    # exactly once.  Total resident footprint is ~50 KB, far below the VMEM
    # limit on every TPU generation, so no tiling is needed.
    out2d = pl.pallas_call(
        encoder_block_kernel,
        out_shape=jax.ShapeDtypeStruct((b * s, e), jnp.float32),
    )(x2d, prep["wqkv"], prep["bqkv"], prep["attn_bias"],
      prep["g1"], prep["beta1"], prep["w1_t"], prep["b1"],
      prep["w2_t"], prep["b2"], prep["g2"], prep["beta2"])

    return out2d.reshape(b, s, e)


# --------------------------- pure-JAX reference ----------------------------- #

def reference(src, p):
    b, s, e = src.shape
    lin = lambda x, wt, bias: x @ wt + bias
    K = lin(src, p["wk_t"], p["bk"]).reshape(b, HEADS, s, D_HEAD)
    Q = lin(src, p["wq_t"], p["bq"]).reshape(b, HEADS, s, D_HEAD)
    V = lin(src, p["wv_t"], p["bv"]).reshape(b, HEADS, s, D_HEAD)
    logits = jnp.einsum("bhqd,bhkd->bhqk", Q, K) / jnp.sqrt(jnp.float32(s))
    attn = jax.nn.softmax(logits, axis=-1)
    o = jnp.einsum("bhqk,bhkd->bhqd", attn, V).reshape(b, s, e)

    def ln(x, g, bb):
        mu = x.mean(-1, keepdims=True)
        var = ((x - mu) ** 2).mean(-1, keepdims=True)
        return (x - mu) / jnp.sqrt(var + LN_EPS) * g + bb

    h1 = ln(o + src, p["g1"], p["beta1"])
    f = lin(h1, p["w1_t"], p["b1"])
    f = 0.5 * f * (1.0 + jax.lax.erf(f / jnp.sqrt(jnp.float32(2.0))))
    f = lin(f, p["w2_t"], p["b2"])
    return ln(f + h1, p["g2"], p["beta2"])


# --------------------------------- main -------------------------------------- #

if __name__ == "__main__":
    key = jax.random.PRNGKey(0)
    ks = jax.random.split(key, 20)

    def init(k, shape, scale=0.1):
        return (jax.random.normal(k, shape, jnp.float32) * scale).astype(jnp.float32)

    params = {
        "wq_t": init(ks[0], (E, E)),  "bq": init(ks[1], (1, E)),
        "wk_t": init(ks[2], (E, E)),  "bk": init(ks[3], (1, E)),
        "wv_t": init(ks[4], (E, E)),  "bv": init(ks[5], (1, E)),
        "g1":   1.0 + init(ks[6], (1, E), 0.05),
        "beta1": init(ks[7], (1, E), 0.05),
        "w1_t": init(ks[8], (E, FF)), "b1": init(ks[9], (1, FF)),
        "w2_t": init(ks[10], (FF, E)), "b2": init(ks[11], (1, E)),
        "g2":   1.0 + init(ks[12], (1, E), 0.05),
        "beta2": init(ks[13], (1, E), 0.05),
    }
    src = jax.random.normal(ks[14], (B, S, E), jnp.float32)

    prep = prepare_params(params)        # one-time: fused weights + attn bias

    out = jax.block_until_ready(encoder_block(src, prep))
    ref = jax.block_until_ready(reference(src, params))

    assert out.shape == (B, S, E) and out.dtype == jnp.float32
    # Tolerance 2e-3 (not 1e-4) only because of the approximate EUP reciprocal
    # in the softmax denominator (~2^-12 relative); any structural/permutation
    # bug would produce O(0.1) errors and still be caught.
    assert jnp.allclose(out, ref, atol=2e-3, rtol=2e-3), "mismatch vs reference"
    print("KERNEL_OK")
</pallas_src>

<mosaic_0001>
module attributes {stable_mosaic.version = 11 : i64} {
  func.func @encoder_block_kernel(%arg0: memref<16x32xf32, #tpu.memory_space<vmem>>, %arg1: memref<32x96xf32, #tpu.memory_space<vmem>>, %arg2: memref<1x96xf32, #tpu.memory_space<vmem>>, %arg3: memref<64x64xf32, #tpu.memory_space<vmem>>, %arg4: memref<1x32xf32, #tpu.memory_space<vmem>>, %arg5: memref<1x32xf32, #tpu.memory_space<vmem>>, %arg6: memref<32x64xf32, #tpu.memory_space<vmem>>, %arg7: memref<1x64xf32, #tpu.memory_space<vmem>>, %arg8: memref<64x32xf32, #tpu.memory_space<vmem>>, %arg9: memref<1x32xf32, #tpu.memory_space<vmem>>, %arg10: memref<1x32xf32, #tpu.memory_space<vmem>>, %arg11: memref<1x32xf32, #tpu.memory_space<vmem>>, %arg12: memref<16x32xf32, #tpu.memory_space<vmem>>) attributes {dimension_semantics = [], scalar_prefetch = 0 : i64, scratch_operands = 0 : i64, tpu.core_type = #tpu.core_type<tc>} {
    %c0 = arith.constant 0 : index
    %c0_0 = arith.constant 0 : index
    %0 = vector.load %arg0[%c0, %c0_0] : memref<16x32xf32, #tpu.memory_space<vmem>>, vector<16x32xf32>
    %c0_1 = arith.constant 0 : index
    %c0_2 = arith.constant 0 : index
    %1 = vector.load %arg1[%c0_1, %c0_2] : memref<32x96xf32, #tpu.memory_space<vmem>>, vector<32x96xf32>
    %cst = arith.constant dense<0.000000e+00> : vector<16x96xf32>
    %2 = tpu.matmul %0, %1, %cst {dimension_numbers = #tpu.dot_dimension_numbers<[1], [0], [0], [1], [0, 0, 1, 1], [], []>} : vector<16x32xf32>, vector<32x96xf32>, vector<16x96xf32> -> vector<16x96xf32>
    %c0_3 = arith.constant 0 : index
    %c0_4 = arith.constant 0 : index
    %3 = vector.load %arg2[%c0_3, %c0_4] : memref<1x96xf32, #tpu.memory_space<vmem>>, vector<1x96xf32>
    %4 = vector.broadcast %3 : vector<1x96xf32> to vector<16x96xf32>
    %5 = arith.addf %2, %4 : vector<16x96xf32>
    %6 = vector.extract_strided_slice %5 {offsets = [0, 0], sizes = [16, 8], strides = [1, 1]} : vector<16x96xf32> to vector<16x8xf32>
    %7 = vector.extract_strided_slice %5 {offsets = [0, 8], sizes = [16, 8], strides = [1, 1]} : vector<16x96xf32> to vector<16x8xf32>
    %8 = vector.extract_strided_slice %5 {offsets = [0, 16], sizes = [16, 8], strides = [1, 1]} : vector<16x96xf32> to vector<16x8xf32>
    %9 = vector.extract_strided_slice %5 {offsets = [0, 24], sizes = [16, 8], strides = [1, 1]} : vector<16x96xf32> to vector<16x8xf32>
    %10 = tpu.concatenate %6, %7, %8, %9 in 0 : vector<16x8xf32>, vector<16x8xf32>, vector<16x8xf32>, vector<16x8xf32> -> vector<64x8xf32>
    %11 = vector.extract_strided_slice %5 {offsets = [0, 32], sizes = [16, 8], strides = [1, 1]} : vector<16x96xf32> to vector<16x8xf32>
    %12 = vector.extract_strided_slice %5 {offsets = [0, 40], sizes = [16, 8], strides = [1, 1]} : vector<16x96xf32> to vector<16x8xf32>
    %13 = vector.extract_strided_slice %5 {offsets = [0, 48], sizes = [16, 8], strides = [1, 1]} : vector<16x96xf32> to vector<16x8xf32>
    %14 = vector.extract_strided_slice %5 {offsets = [0, 56], sizes = [16, 8], strides = [1, 1]} : vector<16x96xf32> to vector<16x8xf32>
    %15 = tpu.concatenate %11, %12, %13, %14 in 0 : vector<16x8xf32>, vector<16x8xf32>, vector<16x8xf32>, vector<16x8xf32> -> vector<64x8xf32>
    %16 = vector.extract_strided_slice %5 {offsets = [0, 64], sizes = [16, 8], strides = [1, 1]} : vector<16x96xf32> to vector<16x8xf32>
    %17 = vector.extract_strided_slice %5 {offsets = [0, 72], sizes = [16, 8], strides = [1, 1]} : vector<16x96xf32> to vector<16x8xf32>
    %18 = vector.extract_strided_slice %5 {offsets = [0, 80], sizes = [16, 8], strides = [1, 1]} : vector<16x96xf32> to vector<16x8xf32>
    %19 = vector.extract_strided_slice %5 {offsets = [0, 88], sizes = [16, 8], strides = [1, 1]} : vector<16x96xf32> to vector<16x8xf32>
    %20 = tpu.concatenate %16, %17, %18, %19 in 0 : vector<16x8xf32>, vector<16x8xf32>, vector<16x8xf32>, vector<16x8xf32> -> vector<64x8xf32>
    %cst_5 = arith.constant dense<0.000000e+00> : vector<64x64xf32>
    %21 = tpu.matmul %10, %15, %cst_5 {dimension_numbers = #tpu.dot_dimension_numbers<[1], [1], [0], [0], [0, 0, 1, 0], [], []>} : vector<64x8xf32>, vector<64x8xf32>, vector<64x64xf32> -> vector<64x64xf32>
    %cst_6 = arith.constant 0.353553385 : f32
    %22 = vector.broadcast %cst_6 : f32 to vector<64x64xf32>
    %23 = arith.mulf %21, %22 : vector<64x64xf32>
    %c0_7 = arith.constant 0 : index
    %c0_8 = arith.constant 0 : index
    %24 = vector.load %arg3[%c0_7, %c0_8] : memref<64x64xf32, #tpu.memory_space<vmem>>, vector<64x64xf32>
    %25 = arith.addf %23, %24 : vector<64x64xf32>
    %cst_9 = arith.constant dense<0xFF800000> : vector<64xf32>
    %26 = vector.multi_reduction <maximumf>, %25, %cst_9 [1] : vector<64x64xf32> to vector<64xf32>
    %27 = vector.shape_cast %26 : vector<64xf32> to vector<64x1xf32>
    %28 = vector.broadcast %27 : vector<64x1xf32> to vector<64x64xf32>
    %29 = arith.subf %25, %28 : vector<64x64xf32>
    %30 = math.exp %29 : vector<64x64xf32>
    %cst_10 = arith.constant dense<0.000000e+00> : vector<64xf32>
    %31 = vector.multi_reduction <add>, %30, %cst_10 [1] : vector<64x64xf32> to vector<64xf32>
    %32 = vector.shape_cast %31 : vector<64xf32> to vector<64x1xf32>
    %cst_11 = arith.constant dense<0.000000e+00> : vector<64x8xf32>
    %33 = tpu.matmul %30, %20, %cst_11 {dimension_numbers = #tpu.dot_dimension_numbers<[1], [0], [0], [1], [0, 0, 1, 1], [], []>} : vector<64x64xf32>, vector<64x8xf32>, vector<64x8xf32> -> vector<64x8xf32>
    %34 = tpu.reciprocal %32 {approx = true} : vector<64x1xf32> -> vector<64x1xf32>
    %35 = vector.broadcast %34 : vector<64x1xf32> to vector<64x8xf32>
    %36 = arith.mulf %33, %35 : vector<64x8xf32>
    %37 = vector.extract_strided_slice %36 {offsets = [0, 0], sizes = [16, 8], strides = [1, 1]} : vector<64x8xf32> to vector<16x8xf32>
    %38 = vector.extract_strided_slice %36 {offsets = [16, 0], sizes = [16, 8], strides = [1, 1]} : vector<64x8xf32> to vector<16x8xf32>
    %39 = vector.extract_strided_slice %36 {offsets = [32, 0], sizes = [16, 8], strides = [1, 1]} : vector<64x8xf32> to vector<16x8xf32>
    %40 = vector.extract_strided_slice %36 {offsets = [48, 0], sizes = [16, 8], strides = [1, 1]} : vector<64x8xf32> to vector<16x8xf32>
    %41 = tpu.concatenate %37, %38, %39, %40 in 1 : vector<16x8xf32>, vector<16x8xf32>, vector<16x8xf32>, vector<16x8xf32> -> vector<16x32xf32>
    %42 = arith.addf %41, %0 : vector<16x32xf32>
    %c0_12 = arith.constant 0 : index
    %c0_13 = arith.constant 0 : index
    %43 = vector.load %arg4[%c0_12, %c0_13] : memref<1x32xf32, #tpu.memory_space<vmem>>, vector<1x32xf32>
    %c0_14 = arith.constant 0 : index
    %c0_15 = arith.constant 0 : index
    %44 = vector.load %arg5[%c0_14, %c0_15] : memref<1x32xf32, #tpu.memory_space<vmem>>, vector<1x32xf32>
    %cst_16 = arith.constant dense<0.000000e+00> : vector<16xf32>
    %45 = vector.multi_reduction <add>, %42, %cst_16 [1] : vector<16x32xf32> to vector<16xf32>
    %46 = vector.shape_cast %45 : vector<16xf32> to vector<16x1xf32>
    %cst_17 = arith.constant 3.200000e+01 : f32
    %47 = vector.broadcast %cst_17 : f32 to vector<16x1xf32>
    %48 = arith.divf %46, %47 : vector<16x1xf32>
    %49 = vector.broadcast %48 : vector<16x1xf32> to vector<16x32xf32>
    %50 = arith.subf %42, %49 : vector<16x32xf32>
    %51 = arith.mulf %50, %50 : vector<16x32xf32>
    %cst_18 = arith.constant dense<0.000000e+00> : vector<16xf32>
    %52 = vector.multi_reduction <add>, %51, %cst_18 [1] : vector<16x32xf32> to vector<16xf32>
    %53 = vector.shape_cast %52 : vector<16xf32> to vector<16x1xf32>
    %cst_19 = arith.constant 3.200000e+01 : f32
    %54 = vector.broadcast %cst_19 : f32 to vector<16x1xf32>
    %55 = arith.divf %53, %54 : vector<16x1xf32>
    %56 = vector.broadcast %48 : vector<16x1xf32> to vector<16x32xf32>
    %57 = arith.subf %42, %56 : vector<16x32xf32>
    %cst_20 = arith.constant 9.99999974E-6 : f32
    %58 = vector.broadcast %cst_20 : f32 to vector<16x1xf32>
    %59 = arith.addf %55, %58 : vector<16x1xf32>
    %60 = math.rsqrt %59 : vector<16x1xf32>
    %61 = vector.broadcast %60 : vector<16x1xf32> to vector<16x32xf32>
    %62 = arith.mulf %57, %61 : vector<16x32xf32>
    %63 = vector.broadcast %43 : vector<1x32xf32> to vector<16x32xf32>
    %64 = arith.mulf %62, %63 : vector<16x32xf32>
    %65 = vector.broadcast %44 : vector<1x32xf32> to vector<16x32xf32>
    %66 = arith.addf %64, %65 : vector<16x32xf32>
    %c0_21 = arith.constant 0 : index
    %c0_22 = arith.constant 0 : index
    %67 = vector.load %arg6[%c0_21, %c0_22] : memref<32x64xf32, #tpu.memory_space<vmem>>, vector<32x64xf32>
    %cst_23 = arith.constant dense<0.000000e+00> : vector<16x64xf32>
    %68 = tpu.matmul %66, %67, %cst_23 {dimension_numbers = #tpu.dot_dimension_numbers<[1], [0], [0], [1], [0, 0, 1, 1], [], []>} : vector<16x32xf32>, vector<32x64xf32>, vector<16x64xf32> -> vector<16x64xf32>
    %c0_24 = arith.constant 0 : index
    %c0_25 = arith.constant 0 : index
    %69 = vector.load %arg7[%c0_24, %c0_25] : memref<1x64xf32, #tpu.memory_space<vmem>>, vector<1x64xf32>
    %70 = vector.broadcast %69 : vector<1x64xf32> to vector<16x64xf32>
    %71 = arith.addf %68, %70 : vector<16x64xf32>
    %cst_26 = arith.constant 5.000000e-01 : f32
    %72 = vector.broadcast %cst_26 : f32 to vector<16x64xf32>
    %73 = arith.mulf %72, %71 : vector<16x64xf32>
    %cst_27 = arith.constant 0.707106769 : f32
    %74 = vector.broadcast %cst_27 : f32 to vector<16x64xf32>
    %75 = arith.mulf %71, %74 : vector<16x64xf32>
    %76 = math.erf %75 : vector<16x64xf32>
    %cst_28 = arith.constant 1.000000e+00 : f32
    %77 = vector.broadcast %cst_28 : f32 to vector<16x64xf32>
    %78 = arith.addf %77, %76 : vector<16x64xf32>
    %79 = arith.mulf %73, %78 : vector<16x64xf32>
    %c0_29 = arith.constant 0 : index
    %c0_30 = arith.constant 0 : index
    %80 = vector.load %arg8[%c0_29, %c0_30] : memref<64x32xf32, #tpu.memory_space<vmem>>, vector<64x32xf32>
    %cst_31 = arith.constant dense<0.000000e+00> : vector<16x32xf32>
    %81 = tpu.matmul %79, %80, %cst_31 {dimension_numbers = #tpu.dot_dimension_numbers<[1], [0], [0], [1], [0, 0, 1, 1], [], []>} : vector<16x64xf32>, vector<64x32xf32>, vector<16x32xf32> -> vector<16x32xf32>
    %c0_32 = arith.constant 0 : index
    %c0_33 = arith.constant 0 : index
    %82 = vector.load %arg9[%c0_32, %c0_33] : memref<1x32xf32, #tpu.memory_space<vmem>>, vector<1x32xf32>
    %83 = vector.broadcast %82 : vector<1x32xf32> to vector<16x32xf32>
    %84 = arith.addf %81, %83 : vector<16x32xf32>
    %85 = arith.addf %84, %66 : vector<16x32xf32>
    %c0_34 = arith.constant 0 : index
    %c0_35 = arith.constant 0 : index
    %86 = vector.load %arg10[%c0_34, %c0_35] : memref<1x32xf32, #tpu.memory_space<vmem>>, vector<1x32xf32>
    %c0_36 = arith.constant 0 : index
    %c0_37 = arith.constant 0 : index
    %87 = vector.load %arg11[%c0_36, %c0_37] : memref<1x32xf32, #tpu.memory_space<vmem>>, vector<1x32xf32>
    %cst_38 = arith.constant dense<0.000000e+00> : vector<16xf32>
    %88 = vector.multi_reduction <add>, %85, %cst_38 [1] : vector<16x32xf32> to vector<16xf32>
    %89 = vector.shape_cast %88 : vector<16xf32> to vector<16x1xf32>
    %cst_39 = arith.constant 3.200000e+01 : f32
    %90 = vector.broadcast %cst_39 : f32 to vector<16x1xf32>
    %91 = arith.divf %89, %90 : vector<16x1xf32>
    %92 = vector.broadcast %91 : vector<16x1xf32> to vector<16x32xf32>
    %93 = arith.subf %85, %92 : vector<16x32xf32>
    %94 = arith.mulf %93, %93 : vector<16x32xf32>
    %cst_40 = arith.constant dense<0.000000e+00> : vector<16xf32>
    %95 = vector.multi_reduction <add>, %94, %cst_40 [1] : vector<16x32xf32> to vector<16xf32>
    %96 = vector.shape_cast %95 : vector<16xf32> to vector<16x1xf32>
    %cst_41 = arith.constant 3.200000e+01 : f32
    %97 = vector.broadcast %cst_41 : f32 to vector<16x1xf32>
    %98 = arith.divf %96, %97 : vector<16x1xf32>
    %99 = vector.broadcast %91 : vector<16x1xf32> to vector<16x32xf32>
    %100 = arith.subf %85, %99 : vector<16x32xf32>
    %cst_42 = arith.constant 9.99999974E-6 : f32
    %101 = vector.broadcast %cst_42 : f32 to vector<16x1xf32>
    %102 = arith.addf %98, %101 : vector<16x1xf32>
    %103 = math.rsqrt %102 : vector<16x1xf32>
    %104 = vector.broadcast %103 : vector<16x1xf32> to vector<16x32xf32>
    %105 = arith.mulf %100, %104 : vector<16x32xf32>
    %106 = vector.broadcast %86 : vector<1x32xf32> to vector<16x32xf32>
    %107 = arith.mulf %105, %106 : vector<16x32xf32>
    %108 = vector.broadcast %87 : vector<1x32xf32> to vector<16x32xf32>
    %109 = arith.addf %107, %108 : vector<16x32xf32>
    %c0_43 = arith.constant 0 : index
    %c0_44 = arith.constant 0 : index
    %110 = vector.load %arg12[%c0_43, %c0_44] : memref<16x32xf32, #tpu.memory_space<vmem>>, vector<16x32xf32>
    tpu.vector_store %arg12[%c0_43, %c0_44], %109 {strides = array<i32>} : memref<16x32xf32, #tpu.memory_space<vmem>>, vector<16x32xf32>,
    return
  }
}

</mosaic_0001>

<bundles_post_ra>
// kernel: encoder_block.1
= control target key start
LH: loop header
LB: loop body
LE: loop exit
PB: predicated region body
PF: predicated region fallthrough
CT: control target
= control target key end

     0   :  { %17 = vsyncpa [#allocation3], 0  ;;  %s1671_s0 = inlined_call_operand.hbm [shape: f32[16,32], index: 0, kind: input, shape index: {}]   ;;  %s1672_s1 = inlined_call_operand.vmem [shape: f32[32,96], index: 1, kind: input, shape index: {}]   ;;  %s1673_s2 = inlined_call_operand.vmem [shape: f32[1,96], index: 2, kind: input, shape index: {}]   ;;  %s1674_s3 = inlined_call_operand.vmem [shape: f32[64,64], index: 3, kind: input, shape index: {}]   ;;  %s1675_s4 = inlined_call_operand.vmem [shape: f32[1,32], index: 4, kind: input, shape index: {}]   ;;  %s1676_s5 = inlined_call_operand.vmem [shape: f32[1,32], index: 5, kind: input, shape index: {}]   ;;  %s1677_s6 = inlined_call_operand.hbm [shape: f32[32,64], index: 6, kind: input, shape index: {}]   ;;  %s1678_s7 = inlined_call_operand.vmem [shape: f32[1,64], index: 7, kind: input, shape index: {}]   ;;  %s1679_s8 = inlined_call_operand.vmem [shape: f32[64,32], index: 8, kind: input, shape index: {}]   ;;  %s1680_s9 = inlined_call_operand.vmem [shape: f32[1,32], index: 9, kind: input, shape index: {}]   ;;  %s1681_s10 = inlined_call_operand.vmem [shape: f32[1,32], index: 10, kind: input, shape index: {}]   ;;  %s1682_s11 = inlined_call_operand.vmem [shape: f32[1,32], index: 11, kind: input, shape index: {}]   ;;  %s1683_s12 = inlined_call_operand.hbm [shape: f32[16,32], index: 12, kind: output, shape index: {}]  }
   0x1   :  { %18 = vsyncpa [#allocation6], 0 }
   0x2   :  { %19 = vsyncpa [#allocation4], 0  ;;  %s1370_s21 = smov [#allocation2]   ;;  %s1298_s25 = scalar_lea.hbm %s1671_s0, 256 }
   0x3   :  { %s25_s22 = sshll.u32 %s1370_s21, 4  ;;  %p1299_p0 = scmp.ne.s32.totalorder %s1671_s0, %s1298_s25  ;;  %s26_s22 = int_to_ptr.vmem [resolvable:$true] %s25_s22 }
   0x4   :  { %p1302_p1 = scmp.lt.u32.totalorder %s1298_s25, %s1671_s0 }
   0x6   :  { %p1304_p2 = pnand %p1302_p1, %p1299_p0 }
   0x8   :  { %1307 = shalt.err (!%p1304_p2)
}
   0x9   :  { %s1308_s30 = scalar_lea.vmem %s26_s22, 256  ;;  %p1313_p4 = scmp.lt.s32.totalorder %s26_s22, %s26_s22 }
   0xa   :  { %p1309_p3 = scmp.ne.s32.totalorder %s26_s22, %s1308_s30  ;;  %p1314_p5 = scmp.lt.s32.totalorder %s1308_s30, %s1308_s30 }
   0xc   :  { %p1315_p6 = por %p1314_p5, %p1313_p4 }
   0xe   :  { %p1316_p7 = pnand %p1315_p6, %p1309_p3 }
  0x10   :  { %1319 = shalt.err (!%p1316_p7)
}
  0x11   :  { %s1371_s13 = smov 128   ;;  %s1372_s14 = smov 8  }
  0x12   :  { %31 = dma.hbm_to_vmem [thread:$0]  %s1671_s0, 256, %s26_s22, [#allocation3], %s1371_s13, %s1371_s13, %s1372_s14  }
  0x13   :  { %s1373_s17 = smov [#allocation5]   ;;  %s1320_s21 = scalar_lea.hbm %s1677_s6, 512 }
  0x14   :  { %s47_s18 = sshll.u32 %s1373_s17, 4  ;;  %p1321_p8 = scmp.ne.s32.totalorder %s1677_s6, %s1320_s21  ;;  %s48_s18 = int_to_ptr.vmem [resolvable:$true] %s47_s18 }
  0x15   :  { %p1324_p9 = scmp.lt.u32.totalorder %s1320_s21, %s1677_s6 }
  0x17   :  { %p1326_p10 = pnand %p1324_p9, %p1321_p8 }
  0x19   :  { %1329 = shalt.err (!%p1326_p10)
}
  0x1a   :  { %s1330_s27 = scalar_lea.vmem %s48_s18, 512  ;;  %p1335_p12 = scmp.lt.s32.totalorder %s48_s18, %s48_s18 }
  0x1b   :  { %p1331_p11 = scmp.ne.s32.totalorder %s48_s18, %s1330_s27  ;;  %p1336_p13 = scmp.lt.s32.totalorder %s1330_s27, %s1330_s27 }
  0x1d   :  { %p1337_p0 = por %p1336_p13, %p1335_p12 }
  0x1f   :  { %p1338_p1 = pnand %p1337_p0, %p1331_p11 }
  0x21   :  { %1341 = shalt.err (!%p1338_p1)
}
  0x22   :  { %53 = dma.hbm_to_vmem [thread:$0]  %s1677_s6, 512, %s48_s18, [#allocation6], %s1371_s13, %s1371_s13, %s1372_s14  }
  0x23   :  { %1364 = dma.done.wait [#allocation3], 256  }
  0x24   :  { %1365 = vsyncadd [#allocation3], 4294967040 }
  0x25   :  { %1366 = dma.done.wait [#allocation6], 512  }
  0x26   :  { %1367 = vsyncadd [#allocation6], 4294966784  ;;  %vm83_vm0 = vcmask 261120   ;;  %v72_v0 = vld [vmem:[%s1672_s1] sm:$0xff]  ;;  %v73_v1 = vld [vmem:[%s1672_s1 + $0x8] sm:$0xff]  ;;  %vm195_vm1 = vcmask 64512  }
  0x27   :  { %v74_v2 = vld [vmem:[%s1672_s1 + $0x10] sm:$0xff]  ;;  %v1130_v3 = vpack.c.bf16 %v73_v1, %v72_v0  ;;  %v75_v4 = vld [vmem:[%s1672_s1 + $0x18] sm:$0xff]  ;;  %v1489_v5 = vld [vmem:[#allocation2] sm:$0xff]  ;;  %s1374_s1 = smov 112   ;;  %s1375_s21 = smov 120   ;;  %vm357_vm3 = vcmask 523264  }
  0x28   :  { %v1134_v6 = vpack.c.bf16 %v75_v4, %v74_v2  ;;  %1041 = vmatprep.mubr.msk.f32.mxu0 %vm83_vm0, %v1489_v5  ;;  %v1493_v7 = vld [vmem:[#allocation2 + $0x8] sm:$0xff]  ;;  %v942_v8 = vld [vmem:[%s1673_s2] ss:$0 sm:$0xff]  ;;  %s1376_s23 = smov 104   ;;  %s1377_s24 = smov 96   ;;  %vm1510_vm2 = vmpackc.low %vm195_vm1, %vm195_vm1  ;;  %vm628_vm4 = vcmask 195584  }
  0x29   :  { %1131 = vmatprep.subr.bf16.mxu0 %v1130_v3  ;;  %s1378_s2 = smov 64   ;;  %v342_v49 = vld [vmem:[%s1674_s3 + $0x8] sm:$0xff]  ;;  %v341_v52 = vld [vmem:[%s1674_s3] sm:$0xff]  ;;  %v344_v57 = vld [vmem:[%s1674_s3 + $0x18] sm:$0xff]  ;;  %vm625_vm5 = vcmask 130048  }
  0x2a   :  { %1133 = vmatpush3.bf16.msra.mxu0 %v1130_v3  ;;  %v343_v0 = vld [vmem:[%s1674_s3 + $0x10] sm:$0xff]  ;;  %v345_v4 = vld [vmem:[%s1674_s3 + $0x20] sm:$0xff] }
  0x2b   :  { %1135 = vmatprep.subr.bf16.mxu0 %v1134_v6 }
  0x2e   :  { %1137 = vmatpush3.bf16.msra.mxu0 %v1134_v6 }
  0x31   :  { %1042 = vmatmul.mubr.msk.f32.vlgmr.msra.gmra.mrb[0].mxu0 %vm83_vm0, %v1493_v7 }
 0x104   :  { %v1043_v9 = vpop.f32.mrb[0].mxu0 }
 0x105   :  { %v156_v10 = vpop.f32.mrb[1].mxu0  ;;  %v162_v12 = vadd.f32 %v1043_v9, %v942_v8 }
 0x106   :  { %v157_v11 = vadd.f32 %v942_v8, %v156_v10  ;;  %v346_v10 = vld [vmem:[%s1674_s3 + $0x28] sm:$0xff] }
 0x108   :  { %171 = vrot.lane.b32.xlu1 %v157_v11, %s1374_s1  ;;  %167 = vrot.lane.b32.xlu0 %v157_v11, %s1375_s21  ;;  %v1214_v13 = vpack.i.bf16 %v162_v12, %v157_v11 }
 0x109   :  { %1060 = vmatprep.mubr.msk.f32.mxu1 %vm195_vm1, %v157_v11 }
 0x10c   :  { %173 = vrot.lane.b32.xlu1 %v162_v12, %s1374_s1  ;;  %169 = vrot.lane.b32.xlu0 %v162_v12, %s1375_s21  ;;  %s1380_s21 = smov 24  }
 0x110   :  { %177 = vrot.lane.b32.xlu1 %v162_v12, %s1376_s23  ;;  %175 = vrot.lane.b32.xlu0 %v157_v11, %s1376_s23 }
 0x114   :  { %1215 = vrot.lane.b32.xlu0 %v1214_v13, %s1377_s24 }
 0x17a   :  { %v172_v14 = vpop.permute.xlu1 %171  ;;  %v168_v15 = vpop.permute.xlu0 %167 }
 0x17e   :  { %v174_v16 = vpop.permute.xlu1 %173  ;;  %v170_v17 = vpop.permute.xlu0 %169 }
 0x17f   :  { %v1501_v18 = vpack.i.bf16 %v174_v16, %v172_v14  ;;  %v1219_v19 = vpack.i.bf16 %v170_v17, %v168_v15 }
 0x181   :  { %1225 = vrot.lane.b32.xlu0 %v1501_v18, %s1377_s24  ;;  %1220 = vrot.lane.b32.xlu1 %v1219_v19, %s1377_s24 }
 0x182   :  { %v178_v20 = vpop.permute.xlu1 %177  ;;  %v176_v21 = vpop.permute.xlu0 %175 }
 0x183   :  { %v1504_v22 = vpack.i.bf16 %v178_v20, %v176_v21 }
 0x185   :  { %1235 = vrot.lane.b32.xlu0 %v1214_v13, %s1378_s2  ;;  %1230 = vrot.lane.b32.xlu1 %v1504_v22, %s1377_s24  ;;  %v348_v13 = vld [vmem:[%s1674_s3 + $0x38] sm:$0xff] }
 0x186   :  { %v1216_v23 = vpop.permute.xlu0 %1215 }
 0x187   :  { %v1218_v24 = vunpack.i.h.bf16 %v1216_v23  ;;  %v1217_v25 = vunpack.i.l.bf16 %v1216_v23  ;;  %v347_v23 = vld [vmem:[%s1674_s3 + $0x30] sm:$0xff]  ;;  %s1379_s3 = smov 16  }
 0x189   :  { %1240 = vrot.lane.b32.xlu1 %v1219_v19, %s1378_s2  ;;  %v1138_v27 = vpack.c.bf16 %v1218_v24, %v1217_v25 }
 0x18b   :  { %1140 = vmatprep.subr.msk.bf16.mxu1 %vm1510_vm2, %v1138_v27 }
 0x18c   :  { %1143 = vmatpush3.bf16.xpose.msk.msra.mxu1 %vm1510_vm2, %v1138_v27 }
 0x1f3   :  { %v1221_v28 = vpop.permute.xlu1 %1220  ;;  %v1226_v29 = vpop.permute.xlu0 %1225 }
 0x1f4   :  { %v1223_v30 = vunpack.i.h.bf16 %v1221_v28  ;;  %v1222_v31 = vunpack.i.l.bf16 %v1221_v28  ;;  %v1228_v32 = vunpack.i.h.bf16 %v1226_v29  ;;  %v1227_v33 = vunpack.i.l.bf16 %v1226_v29 }
 0x1f6   :  { %v1144_v34 = vpack.c.bf16 %v1223_v30, %v1222_v31  ;;  %v1150_v37 = vpack.c.bf16 %v1228_v32, %v1227_v33 }
 0x1f7   :  { %v1231_v35 = vpop.permute.xlu1 %1230  ;;  %v1236_v36 = vpop.permute.xlu0 %1235 }
 0x1f8   :  { %v1238_v38 = vunpack.i.h.bf16 %v1236_v36  ;;  %v1237_v39 = vunpack.i.l.bf16 %v1236_v36  ;;  %1146 = vmatprep.subr.msk.bf16.mxu1 %vm1510_vm2, %v1144_v34  ;;  %v1233_v42 = vunpack.i.h.bf16 %v1231_v35  ;;  %v1232_v43 = vunpack.i.l.bf16 %v1231_v35 }
 0x1f9   :  { %1149 = vmatpush3.bf16.xpose.msk.msra.mxu1 %vm1510_vm2, %v1144_v34 }
 0x1fa   :  { %v1162_v40 = vpack.c.bf16 %v1238_v38, %v1237_v39  ;;  %1152 = vmatprep.subr.msk.bf16.mxu1 %vm1510_vm2, %v1150_v37  ;;  %v1156_v47 = vpack.c.bf16 %v1233_v42, %v1232_v43 }
 0x1fb   :  { %v1241_v41 = vpop.permute.xlu1 %1240 }
 0x1fc   :  { %v1243_v44 = vunpack.i.h.bf16 %v1241_v41  ;;  %v1242_v45 = vunpack.i.l.bf16 %v1241_v41  ;;  %1163 = vmatprep.subr.bf16.mxu0 %v1162_v40 }
 0x1fd   :  { %1165 = vmatpush3.bf16.msra.mxu0 %v1162_v40 }
 0x1fe   :  { %v1166_v46 = vpack.c.bf16 %v1243_v44, %v1242_v45 }
 0x200   :  { %1167 = vmatprep.subr.bf16.mxu0 %v1166_v46 }
 0x201   :  { %1155 = vmatpush3.bf16.xpose.msk.msra.mxu1 %vm1510_vm2, %v1150_v37  ;;  %1169 = vmatpush3.bf16.msra.mxu0 %v1166_v46 }
 0x202   :  { %1158 = vmatprep.subr.msk.bf16.mxu1 %vm1510_vm2, %v1156_v47 }
 0x209   :  { %1161 = vmatpush3.bf16.xpose.msk.msra.mxu1 %vm1510_vm2, %v1156_v47 }
 0x210   :  { %1061 = vmatmul.mubr.msk.f32.vlgmr.msra.gmra.mrb[0].mxu1 %vm195_vm1, %v162_v12 }
 0x211   :  { %1063 = vmatprep.mubr.msk.f32.mxu1 %vm195_vm1, %v168_v15 }
 0x214   :  { %1064 = vmatmul.mubr.msk.f32.gmra.mrb[2].mxu1 %vm195_vm1, %v170_v17 }
 0x215   :  { %1066 = vmatprep.mubr.msk.f32.mxu1 %vm195_vm1, %v172_v14 }
 0x218   :  { %1067 = vmatmul.mubr.msk.f32.gmra.mrb[4].mxu1 %vm195_vm1, %v174_v16 }
 0x219   :  { %1069 = vmatprep.mubr.msk.f32.mxu1 %vm195_vm1, %v176_v21 }
 0x21c   :  { %1070 = vmatmul.mubr.msk.f32.gmra.mrb[6].mxu1 %vm195_vm1, %v178_v20 }
 0x2e3   :  { %v1062_v48 = vpop.f32.mrb[0].mxu1 }
 0x2e4   :  { %v334_v50 = vmul.f32 0.35355338, %v1062_v48  ;;  %v294_v51 = vpop.f32.mrb[1].mxu1 }
 0x2e5   :  { %v333_v53 = vmul.f32 0.35355338, %v294_v51 }
 0x2e6   :  { %v1544_v54 = vadd.f32 %v342_v49, %v334_v50 }
 0x2e7   :  { %v1065_v55 = vpop.f32.mrb[2].mxu1  ;;  %v349_v56 = vadd.f32 %v341_v52, %v333_v53 }
 0x2e8   :  { %v336_v58 = vmul.f32 0.35355338, %v1065_v55  ;;  %v304_v59 = vpop.f32.mrb[3].mxu1  ;;  %v361_v60 = vsel %vm357_vm3, %v1544_v54, -inf }
 0x2e9   :  { %v335_v61 = vmul.f32 0.35355338, %v304_v59  ;;  %362 = vmax.xlane.f32.xlu1 %v361_v60  ;;  %v358_v62 = vsel %vm357_vm3, %v349_v56, -inf }
 0x2ea   :  { %359 = vmax.xlane.f32.xlu0 %v358_v62  ;;  %v352_v63 = vadd.f32 %v344_v57, %v336_v58 }
 0x2eb   :  { %v1068_v1 = vpop.f32.mrb[4].mxu1  ;;  %v351_v9 = vadd.f32 %v343_v0, %v335_v61 }
 0x2ec   :  { %v314_v2 = vpop.f32.mrb[5].mxu1  ;;  %v367_v3 = vsel %vm357_vm3, %v352_v63, -inf  ;;  %v338_v6 = vmul.f32 0.35355338, %v1068_v1 }
 0x2ed   :  { %v337_v8 = vmul.f32 0.35355338, %v314_v2  ;;  %v364_v17 = vsel %vm357_vm3, %v351_v9, -inf }
 0x2ee   :  { %368 = vmax.xlane.f32.xlu0 %v367_v3  ;;  %v354_v20 = vadd.f32 %v346_v10, %v338_v6 }
 0x2ef   :  { %v1071_v11 = vpop.f32.mrb[6].mxu1  ;;  %v353_v12 = vadd.f32 %v345_v4, %v337_v8 }
 0x2f0   :  { %v340_v14 = vmul.f32 0.35355338, %v1071_v11  ;;  %v324_v15 = vpop.f32.mrb[7].mxu1  ;;  %v373_v25 = vsel %vm357_vm3, %v354_v20, -inf }
 0x2f1   :  { %v339_v16 = vmul.f32 0.35355338, %v324_v15  ;;  %v370_v19 = vsel %vm357_vm3, %v353_v12, -inf }
 0x2f2   :  { %365 = vmax.xlane.f32.xlu0 %v364_v17  ;;  %371 = vmax.xlane.f32.xlu1 %v370_v19  ;;  %v356_v21 = vadd.f32 %v348_v13, %v340_v14 }
 0x2f3   :  { %v355_v26 = vadd.f32 %v347_v23, %v339_v16 }
 0x2f4   :  { %v379_v24 = vsel %vm357_vm3, %v356_v21, -inf }
 0x2f5   :  { %v376_v27 = vsel %vm357_vm3, %v355_v26, -inf }
 0x2f6   :  { %374 = vmax.xlane.f32.xlu0 %v373_v25  ;;  %380 = vmax.xlane.f32.xlu1 %v379_v24 }
 0x2fa   :  { %377 = vmax.xlane.f32.xlu1 %v376_v27 }
 0x30b   :  { %1250 = vrot.lane.b32.xlu1 %v1504_v22, %s1378_s2 }
 0x30c   :  { %1245 = vrot.lane.b32.xlu0 %v1501_v18, %s1378_s2  ;;  %s1381_s2 = smov [#allocation7]  }
 0x30d   :  { %s929_s25 = sshll.u32 %s1381_s2, 4  ;;  %s930_s25 = int_to_ptr.vmem [resolvable:$true] %s929_s25 }
 0x30e   :  { %s1342_s26 = scalar_lea.vmem %s930_s25, 256  ;;  %p1347_p3 = scmp.lt.s32.totalorder %s930_s25, %s930_s25 }
 0x30f   :  { %p1343_p2 = scmp.ne.s32.totalorder %s930_s25, %s1342_s26  ;;  %p1348_p4 = scmp.lt.s32.totalorder %s1342_s26, %s1342_s26 }
 0x311   :  { %p1349_p5 = por %p1348_p4, %p1347_p3 }
 0x313   :  { %p1350_p6 = pnand %p1349_p5, %p1343_p2 }
 0x376   :  { %v363_v31 = vpop.xlane.xlu1 %362 }
 0x377   :  { %v360_v28 = vpop.xlane.xlu0 %359  ;;  %v383_v38 = vsub.f32 %v1544_v54, %v363_v31 }
 0x378   :  { %v382_v29 = vsub.f32 %v349_v56, %v360_v28 }
 0x379   :  { %v392_v42 = vmul.f32 1.442695, %v383_v38 }
 0x37a   :  { %v390_v30 = vmul.f32 1.442695, %v382_v29 }
 0x37b   :  { %v369_v32 = vpop.xlane.xlu0 %368 }
 0x37c   :  { %1254 = vpow2.f32 %v390_v30  ;;  %v385_v33 = vsub.f32 %v352_v63, %v369_v32 }
 0x37e   :  { %v396_v34 = vmul.f32 1.442695, %v385_v33 }
 0x37f   :  { %v366_v35 = vpop.xlane.xlu0 %365  ;;  %v372_v36 = vpop.xlane.xlu1 %371 }
 0x380   :  { %1256 = vpow2.f32 %v396_v34  ;;  %v384_v37 = vsub.f32 %v351_v9, %v366_v35  ;;  %v386_v40 = vsub.f32 %v353_v12, %v372_v36 }
 0x382   :  { %v394_v39 = vmul.f32 1.442695, %v384_v37  ;;  %v398_v44 = vmul.f32 1.442695, %v386_v40 }
 0x383   :  { %v375_v22 = vpop.xlane.xlu0 %374  ;;  %v381_v41 = vpop.xlane.xlu1 %380 }
 0x384   :  { %1258 = vpow2.f32 %v394_v39  ;;  %v387_v18 = vsub.f32 %v354_v20, %v375_v22  ;;  %v389_v46 = vsub.f32 %v356_v21, %v381_v41 }
 0x386   :  { %v1255_v43 = vpop.eup %1254  ;;  %v400_v45 = vmul.f32 1.442695, %v387_v18  ;;  %v404_v53 = vmul.f32 1.442695, %v389_v46 }
 0x387   :  { %1088 = vmatprep.mubr.msk.f32.mxu0 %vm357_vm3, %v1255_v43  ;;  %v1246_v47 = vpop.permute.xlu0 %1245  ;;  %v378_v48 = vpop.xlane.xlu1 %377  ;;  %v406_v10 = vsel %vm357_vm3, %v1255_v43, 0.0 }
 0x388   :  { %1260 = vpow2.f32 %v400_v45  ;;  %v1248_v49 = vunpack.i.h.bf16 %v1246_v47  ;;  %v1247_v50 = vunpack.i.l.bf16 %v1246_v47  ;;  %v388_v51 = vsub.f32 %v355_v26, %v378_v48 }
 0x389   :  { %1262 = vpow2.f32 %v392_v42 }
 0x38a   :  { %v1257_v52 = vpop.eup %1256  ;;  %1264 = vpow2.f32 %v398_v44  ;;  %v1170_v54 = vpack.c.bf16 %v1248_v49, %v1247_v50  ;;  %v402_v55 = vmul.f32 1.442695, %v388_v51 }
 0x38b   :  { %v1251_v56 = vpop.permute.xlu1 %1250  ;;  %v415_v57 = vsel %vm357_vm3, %v1257_v52, 0.0 }
 0x38c   :  { %1266 = vpow2.f32 %v402_v55  ;;  %v1253_v58 = vunpack.i.h.bf16 %v1251_v56  ;;  %v1252_v59 = vunpack.i.l.bf16 %v1251_v56  ;;  %1171 = vmatprep.subr.bf16.mxu0 %v1170_v54  ;;  %416 = vadd.xlane.f32.xlu1 %v415_v57 }
 0x38d   :  { %1173 = vmatpush3.bf16.msra.mxu0 %v1170_v54  ;;  %1268 = vpow2.f32 %v404_v53 }
 0x38e   :  { %v1259_v60 = vpop.eup %1258  ;;  %v1174_v61 = vpack.c.bf16 %v1253_v58, %v1252_v59 }
 0x38f   :  { %v412_v62 = vsel %vm357_vm3, %v1259_v60, 0.0 }
 0x390   :  { %413 = vadd.xlane.f32.xlu0 %v412_v62  ;;  %1175 = vmatprep.subr.bf16.mxu0 %v1174_v61 }
 0x391   :  { %1177 = vmatpush3.bf16.msra.mxu0 %v1174_v61 }
 0x392   :  { %v1261_v63 = vpop.eup %1260 }
 0x393   :  { %v1263_v0 = vpop.eup %1262  ;;  %v421_v1 = vsel %vm357_vm3, %v1261_v63, 0.0 }
 0x394   :  { %v1265_v2 = vpop.eup %1264  ;;  %422 = vadd.xlane.f32.xlu0 %v421_v1  ;;  %1089 = vmatmul.mubr.msk.f32.vlgmr.msra.gmra.mrb[2].mxu0 %vm357_vm3, %v1263_v0  ;;  %v409_v11 = vsel %vm357_vm3, %v1263_v0, 0.0 }
 0x395   :  { %1091 = vmatprep.mubr.msk.f32.mxu0 %vm357_vm3, %v1259_v60  ;;  %v418_v4 = vsel %vm357_vm3, %v1265_v2, 0.0 }
 0x396   :  { %v1267_v3 = vpop.eup %1266 }
 0x397   :  { %v424_v6 = vsel %vm357_vm3, %v1267_v3, 0.0  ;;  %v1269_v8 = vpop.eup %1268 }
 0x398   :  { %419 = vadd.xlane.f32.xlu0 %v418_v4  ;;  %425 = vadd.xlane.f32.xlu1 %v424_v6  ;;  %v427_v9 = vsel %vm357_vm3, %v1269_v8, 0.0  ;;  %v678_v6 = vld [vmem:[#allocation5] sm:$0xff] }
 0x399   :  { %1092 = vmatmul.mubr.msk.f32.gmra.mrb[4].mxu0 %vm357_vm3, %v1257_v52 }
 0x39a   :  { %1094 = vmatprep.mubr.msk.f32.mxu0 %vm357_vm3, %v1265_v2 }
 0x39c   :  { %428 = vadd.xlane.f32.xlu0 %v427_v9  ;;  %407 = vadd.xlane.f32.xlu1 %v406_v10  ;;  %v680_v9 = vld [vmem:[#allocation5 + $0x10] sm:$0xff]  ;;  %v681_v10 = vld [vmem:[#allocation5 + $0x18] sm:$0xff] }
 0x39d   :  { %1095 = vmatmul.mubr.msk.f32.gmra.mrb[6].mxu0 %vm357_vm3, %v1261_v63 }
 0x39e   :  { %1097 = vmatprep.mubr.msk.f32.mxu0 %vm357_vm3, %v1267_v3 }
 0x3a0   :  { %410 = vadd.xlane.f32.xlu0 %v409_v11  ;;  %v1182_v11 = vpack.c.bf16 %v681_v10, %v680_v9 }
 0x3a1   :  { %1098 = vmatmul.mubr.msk.f32.gmra.mrb[8].mxu0 %vm357_vm3, %v1269_v8  ;;  %v679_v8 = vld [vmem:[#allocation5 + $0x8] sm:$0xff] }
 0x419   :  { %v417_v13 = vpop.xlane.xlu1 %416 }
 0x41a   :  { %1270 = vrcp.f32 %v417_v13 }
 0x41d   :  { %v414_v12 = vpop.xlane.xlu0 %413 }
 0x41e   :  { %1272 = vrcp.f32 %v414_v12 }
 0x421   :  { %v423_v14 = vpop.xlane.xlu0 %422 }
 0x422   :  { %1274 = vrcp.f32 %v423_v14 }
 0x424   :  { %v1271_v20 = vpop.eup %1270 }
 0x425   :  { %v420_v15 = vpop.xlane.xlu0 %419  ;;  %v426_v17 = vpop.xlane.xlu1 %425 }
 0x426   :  { %1276 = vrcp.f32 %v420_v15 }
 0x427   :  { %1278 = vrcp.f32 %v426_v17 }
 0x428   :  { %v1273_v24 = vpop.eup %1272 }
 0x429   :  { %v429_v21 = vpop.xlane.xlu0 %428  ;;  %v408_v40 = vpop.xlane.xlu1 %407 }
 0x42a   :  { %1280 = vrcp.f32 %v429_v21 }
 0x42b   :  { %1282 = vrcp.f32 %v408_v40  ;;  %v787_v40 = vld [vmem:[%s1679_s8 + $0x38] sm:$0xff] }
 0x42c   :  { %v1275_v28 = vpop.eup %1274 }
 0x42d   :  { %v411_v22 = vpop.xlane.xlu0 %410 }
 0x42e   :  { %1284 = vrcp.f32 %v411_v22 }
 0x430   :  { %v1277_v32 = vpop.eup %1276 }
 0x431   :  { %v1279_v34 = vpop.eup %1278 }
 0x434   :  { %v1281_v38 = vpop.eup %1280 }
 0x435   :  { %v1283_v43 = vpop.eup %1282 }
 0x438   :  { %v1285_v45 = vpop.eup %1284 }
 0x467   :  { %v1090_v16 = vpop.f32.mrb[2].mxu0 }
 0x468   :  { %v544_v19 = vpop.f32.mrb[3].mxu0  ;;  %v592_v49 = vmul.f32 %v1285_v45, %v1090_v16 }
 0x469   :  { %v591_v44 = vmul.f32 %v1283_v43, %v544_v19 }
 0x46c   :  { %v1093_v23 = vpop.f32.mrb[4].mxu0 }
 0x46d   :  { %v594_v25 = vmul.f32 %v1271_v20, %v1093_v23  ;;  %v554_v26 = vpop.f32.mrb[5].mxu0  ;;  %v969_v20 = vld [vmem:[%s1675_s4] ss:$0 sm:$0xff] }
 0x46e   :  { %v593_v27 = vmul.f32 %v1273_v24, %v554_v26  ;;  %v970_v23 = vld [vmem:[%s1676_s5] ss:$0 sm:$0xff] }
 0x46f   :  { %603 = vrot.lane.b32.xlu0 %v594_v25, %s1372_s14 }
 0x470   :  { %601 = vrot.lane.b32.xlu1 %v593_v27, %s1372_s14  ;;  %v1096_v29 = vpop.f32.mrb[6].mxu0 }
 0x471   :  { %v596_v30 = vmul.f32 %v1275_v28, %v1096_v29  ;;  %v564_v31 = vpop.f32.mrb[7].mxu0 }
 0x472   :  { %v595_v36 = vmul.f32 %v1277_v32, %v564_v31  ;;  %v781_v31 = vld [vmem:[%s1679_s8 + $0x8] sm:$0xff] }
 0x474   :  { %611 = vrot.lane.b32.xlu1 %v596_v30, %s1379_s3  ;;  %v1099_v33 = vpop.f32.mrb[8].mxu0  ;;  %v780_v30 = vld [vmem:[%s1679_s8] sm:$0xff] }
 0x475   :  { %v574_v35 = vpop.f32.mrb[9].mxu0  ;;  %v598_v39 = vmul.f32 %v1281_v38, %v1099_v33  ;;  %v1186_v32 = vpack.c.bf16 %v781_v31, %v780_v30  ;;  %v782_v33 = vld [vmem:[%s1679_s8 + $0x10] sm:$0xff] }
 0x476   :  { %v597_v37 = vmul.f32 %v1279_v34, %v574_v35  ;;  %v783_v34 = vld [vmem:[%s1679_s8 + $0x18] sm:$0xff] }
 0x477   :  { %1187 = vmatprep.subr.bf16.mxu1 %v1186_v32  ;;  %v1190_v35 = vpack.c.bf16 %v783_v34, %v782_v33 }
 0x478   :  { %609 = vrot.lane.b32.xlu1 %v595_v36, %s1379_s3  ;;  %617 = vrot.lane.b32.xlu0 %v597_v37, %s1380_s21  ;;  %v784_v36 = vld [vmem:[%s1679_s8 + $0x20] sm:$0xff]  ;;  %v785_v37 = vld [vmem:[%s1679_s8 + $0x28] sm:$0xff] }
 0x479   :  { %1189 = vmatpush3.bf16.msra.mxu1 %v1186_v32  ;;  %v1194_v38 = vpack.c.bf16 %v785_v37, %v784_v36 }
 0x47a   :  { %1191 = vmatprep.subr.bf16.mxu1 %v1190_v35 }
 0x47c   :  { %619 = vrot.lane.b32.xlu1 %v598_v39, %s1380_s21  ;;  %v786_v39 = vld [vmem:[%s1679_s8 + $0x30] sm:$0xff] }
 0x47d   :  { %1193 = vmatpush3.bf16.msra.mxu1 %v1190_v35  ;;  %v1198_v22 = vpack.c.bf16 %v787_v40, %v786_v39 }
 0x47e   :  { %1195 = vmatprep.subr.bf16.mxu1 %v1194_v38 }
 0x481   :  { %1197 = vmatpush3.bf16.msra.mxu1 %v1194_v38 }
 0x482   :  { %1199 = vmatprep.subr.bf16.mxu1 %v1198_v22 }
 0x485   :  { %1201 = vmatpush3.bf16.msra.mxu1 %v1198_v22 }
 0x4e1   :  { %v604_v18 = vpop.permute.xlu0 %603 }
 0x4e2   :  { %v602_v41 = vpop.permute.xlu1 %601  ;;  %v624_v52 = vsel %vm195_vm1, %v592_v49, %v604_v18 }
 0x4e3   :  { %v623_v46 = vsel %vm195_vm1, %v591_v44, %v602_v41  ;;  %v971_v41 = vld [vmem:[%s1678_s7] ss:$0 sm:$0xff] }
 0x4e6   :  { %v612_v42 = vpop.permute.xlu1 %611 }
 0x4e7   :  { %v627_v54 = vsel %vm625_vm5, %v624_v52, %v612_v42 }
 0x4ea   :  { %v610_v47 = vpop.permute.xlu1 %609  ;;  %v618_v48 = vpop.permute.xlu0 %617 }
 0x4eb   :  { %v626_v50 = vsel %vm625_vm5, %v623_v46, %v610_v47 }
 0x4ec   :  { %v629_v51 = vsel %vm628_vm4, %v626_v50, %v618_v48 }
 0x4ed   :  { %v631_v53 = vadd.f32 %v629_v51, %v1489_v5 }
 0x4ee   :  { %v620_v55 = vpop.permute.xlu1 %619 }
 0x4ef   :  { %v630_v56 = vsel %vm628_vm4, %v627_v54, %v620_v55  ;;  %v635_v57 = vsel %vm83_vm0, %v631_v53, 0.0  ;;  %v974_v55 = vld [vmem:[%s1680_s9] ss:$0 sm:$0xff] }
 0x4f0   :  { %636 = vadd.xlane.f32.xlu0 %v635_v57  ;;  %v632_v58 = vadd.f32 %v630_v56, %v1493_v7  ;;  %v1178_v7 = vpack.c.bf16 %v679_v8, %v678_v6 }
 0x4f2   :  { %v638_v59 = vsel %vm83_vm0, %v632_v58, 0.0  ;;  %1179 = vmatprep.subr.bf16.mxu0 %v1178_v7 }
 0x4f3   :  { %639 = vadd.xlane.f32.xlu1 %v638_v59  ;;  %1181 = vmatpush3.bf16.msra.mxu0 %v1178_v7 }
 0x4f4   :  { %1183 = vmatprep.subr.bf16.mxu0 %v1182_v11 }
 0x4f7   :  { %1185 = vmatpush3.bf16.msra.mxu0 %v1182_v11 }
 0x57d   :  { %v637_v60 = vpop.xlane.xlu0 %636 }
 0x57e   :  { %v642_v61 = vmul.f32 0.03125, %v637_v60 }
 0x580   :  { %v644_v62 = vsub.f32 %v631_v53, %v642_v61  ;;  %v640_v63 = vpop.xlane.xlu1 %639 }
 0x581   :  { %v643_v0 = vmul.f32 0.03125, %v640_v63 }
 0x582   :  { %v646_v1 = vmul.f32 %v644_v62, %v644_v62 }
 0x583   :  { %v645_v2 = vsub.f32 %v632_v58, %v643_v0 }
 0x584   :  { %v648_v5 = vsel %vm83_vm0, %v646_v1, 0.0 }
 0x585   :  { %649 = vadd.xlane.f32.xlu0 %v648_v5  ;;  %v647_v3 = vmul.f32 %v645_v2, %v645_v2 }
 0x587   :  { %v651_v4 = vsel %vm83_vm0, %v647_v3, 0.0 }
 0x589   :  { %652 = vadd.xlane.f32.xlu0 %v651_v4 }
 0x612   :  { %v650_v12 = vpop.xlane.xlu0 %649 }
 0x613   :  { %v654_v13 = vmul.f32 0.03125, %v650_v12 }
 0x615   :  { %v656_v14 = vadd.f32 1e-05, %v654_v13 }
 0x616   :  { %v653_v15 = vpop.xlane.xlu0 %652 }
 0x617   :  { %1286 = vrsqrt.f32 %v656_v14  ;;  %v655_v16 = vmul.f32 0.03125, %v653_v15 }
 0x619   :  { %v657_v17 = vadd.f32 1e-05, %v655_v16 }
 0x61b   :  { %1288 = vrsqrt.f32 %v657_v17  ;;  %v977_v17 = vld [vmem:[%s1681_s10] ss:$0 sm:$0xff] }
 0x621   :  { %v1287_v19 = vpop.eup %1286 }
 0x622   :  { %v660_v21 = vmul.f32 %v1287_v19, %v644_v62 }
 0x624   :  { %v668_v24 = vmul.f32 %v969_v20, %v660_v21 }
 0x625   :  { %v1289_v25 = vpop.eup %1288 }
 0x626   :  { %v661_v26 = vmul.f32 %v1289_v25, %v645_v2  ;;  %v676_v27 = vadd.f32 %v970_v23, %v668_v24 }
 0x628   :  { %v669_v28 = vmul.f32 %v969_v20, %v661_v26  ;;  %1108 = vmatprep.mubr.msk.f32.mxu0 %vm83_vm0, %v676_v27 }
 0x62a   :  { %v677_v29 = vadd.f32 %v970_v23, %v669_v28  ;;  %v978_v23 = vld [vmem:[%s1682_s11] ss:$0 sm:$0xff] }
 0x62c   :  { %1109 = vmatmul.mubr.msk.f32.vlgmr.msra.gmra.mrb[10].mxu0 %vm83_vm0, %v677_v29 }
 0x6ff   :  { %v1110_v18 = vpop.f32.mrb[10].mxu0 }
 0x700   :  { %v767_v42 = vadd.f32 %v1110_v18, %v971_v41  ;;  %v761_v43 = vpop.f32.mrb[11].mxu0 }
 0x701   :  { %v762_v44 = vadd.f32 %v971_v41, %v761_v43 }
 0x702   :  { %v773_v45 = vmul.f32 0.70710677, %v767_v42  ;;  %v771_v52 = vmul.f32 0.5, %v767_v42 }
 0x703   :  { %v772_v46 = vmul.f32 0.70710677, %v762_v44  ;;  %v770_v50 = vmul.f32 0.5, %v762_v44 }
 0x704   :  { %1290 = verf.f32 %v773_v45 }
 0x705   :  { %1292 = verf.f32 %v772_v46 }
 0x70e   :  { %v1291_v47 = vpop.eup %1290 }
 0x70f   :  { %v1293_v48 = vpop.eup %1292  ;;  %v777_v49 = vadd.f32 1.0, %v1291_v47 }
 0x710   :  { %v776_v51 = vadd.f32 1.0, %v1293_v48 }
 0x711   :  { %v779_v54 = vmul.f32 %v777_v49, %v771_v52 }
 0x712   :  { %v778_v53 = vmul.f32 %v776_v51, %v770_v50 }
 0x714   :  { %1127 = vmatprep.mubr.msk.f32.mxu1 %vm357_vm3, %v778_v53 }
 0x715   :  { %1128 = vmatmul.mubr.msk.f32.vlgmr.msra.gmra.mrb[8].mxu1 %vm357_vm3, %v779_v54 }
 0x7e8   :  { %v1129_v56 = vpop.f32.mrb[8].mxu1 }
 0x7e9   :  { %v873_v57 = vadd.f32 %v1129_v56, %v974_v55  ;;  %v867_v58 = vpop.f32.mrb[9].mxu1 }
 0x7ea   :  { %v868_v59 = vadd.f32 %v974_v55, %v867_v58 }
 0x7eb   :  { %v877_v60 = vadd.f32 %v873_v57, %v677_v29 }
 0x7ec   :  { %v876_v61 = vadd.f32 %v868_v59, %v676_v27 }
 0x7ed   :  { %v883_v62 = vsel %vm83_vm0, %v877_v60, 0.0 }
 0x7ee   :  { %884 = vadd.xlane.f32.xlu0 %v883_v62  ;;  %v880_v63 = vsel %vm83_vm0, %v876_v61, 0.0 }
 0x7ef   :  { %881 = vadd.xlane.f32.xlu1 %v880_v63 }
 0x87b   :  { %v885_v0 = vpop.xlane.xlu0 %884 }
 0x87c   :  { %v887_v1 = vmul.f32 0.03125, %v885_v0  ;;  %v882_v2 = vpop.xlane.xlu1 %881 }
 0x87d   :  { %v886_v5 = vmul.f32 0.03125, %v882_v2 }
 0x87e   :  { %v889_v3 = vsub.f32 %v877_v60, %v887_v1 }
 0x87f   :  { %v888_v4 = vsub.f32 %v876_v61, %v886_v5 }
 0x880   :  { %v891_v6 = vmul.f32 %v889_v3, %v889_v3 }
 0x881   :  { %v890_v8 = vmul.f32 %v888_v4, %v888_v4 }
 0x882   :  { %v895_v7 = vsel %vm83_vm0, %v891_v6, 0.0 }
 0x883   :  { %896 = vadd.xlane.f32.xlu0 %v895_v7  ;;  %v892_v9 = vsel %vm83_vm0, %v890_v8, 0.0 }
 0x884   :  { %893 = vadd.xlane.f32.xlu1 %v892_v9 }
 0x910   :  { %v897_v10 = vpop.xlane.xlu0 %896 }
 0x911   :  { %v899_v11 = vmul.f32 0.03125, %v897_v10  ;;  %v894_v12 = vpop.xlane.xlu1 %893 }
 0x912   :  { %v898_v13 = vmul.f32 0.03125, %v894_v12 }
 0x913   :  { %v901_v14 = vadd.f32 1e-05, %v899_v11 }
 0x914   :  { %v900_v15 = vadd.f32 1e-05, %v898_v13 }
 0x915   :  { %1294 = vrsqrt.f32 %v901_v14 }
 0x916   :  { %1296 = vrsqrt.f32 %v900_v15 }
 0x91f   :  { %v1295_v16 = vpop.eup %1294 }
 0x920   :  { %v1297_v19 = vpop.eup %1296  ;;  %v905_v20 = vmul.f32 %v1295_v16, %v889_v3 }
 0x921   :  { %v904_v21 = vmul.f32 %v1297_v19, %v888_v4 }
 0x922   :  { %v913_v24 = vmul.f32 %v977_v17, %v905_v20 }
 0x923   :  { %v912_v25 = vmul.f32 %v977_v17, %v904_v21 }
 0x924   :  { %v921_v26 = vadd.f32 %v978_v23, %v913_v24 }
 0x925   :  { %v920_v27 = vadd.f32 %v978_v23, %v912_v25 }
 0x926   :  { %923 = vst.msk [vmem:[#allocation7 + $0x8] sm:$0xff] %vm83_vm0, %v921_v26 }
 0x927   :  { %922 = vst.msk [vmem:[#allocation7] sm:$0xff] %vm83_vm0, %v920_v27 }
 0x928   :  { %1353 = shalt.err (!%p1350_p6)
}
 0x929   :  { %s1354_s27 = scalar_lea.hbm %s1683_s12, 256 }
 0x92a   :  { %p1355_p7 = scmp.ne.s32.totalorder %s1683_s12, %s1354_s27  ;;  %p1358_p8 = scmp.lt.u32.totalorder %s1354_s27, %s1683_s12 }
 0x92c   :  { %p1360_p9 = pnand %p1358_p8, %p1355_p7 }
 0x92e   :  { %1363 = shalt.err (!%p1360_p9)
}
 0x92f   :  { %935 = dma.vmem_to_hbm [thread:$0]  %s930_s25, 256, %s1683_s12, [#allocation4], %s1371_s13, %s1371_s13, %s1372_s14  }
 0x930   :  { %1368 = dma.done.wait [#allocation4], 256  }
 0x931   :  { %1369 = vsyncadd [#allocation4], 4294967040 }
 0x932   :  { %939 = vsyncpa [#allocation3], 1 }
 0x933   :  { %940 = vsyncpa [#allocation6], 1 }
 0x934   :  { %941 = vsyncpa [#allocation4], 1 }

</bundles_post_ra>
